<compile_context>
chip_gen: v7x
topology: tpu7x:2x2x1
jax: 0.10.0
libtpu: 0.0.40
codegen_flags: <defaults>
</compile_context>

<pallas_src>
import functools

import jax
import jax.numpy as jnp
from jax.experimental import pallas as pl
from jax.experimental.pallas import tpu as pltpu


def _contrastive_kernel(x0_ref, x1_ref, y_ref, partial_ref, eucl_ref, *,
                        margin, batch, block_b, mask_last):
    i = pl.program_id(0)

    # Upcast in-kernel; compute everything in f32.
    diff = x0_ref[...].astype(jnp.float32) - x1_ref[...].astype(jnp.float32)
    dist_sq = jnp.sum(diff * diff, axis=1, keepdims=True)        # (TB, 1)
    euclidean = jnp.sqrt(dist_sq)                                # (TB, 1)
    hinge = jnp.maximum(margin - euclidean, 0.0)                 # (TB, 1)
    y = y_ref[...].astype(jnp.float32)                           # (TB, 1)
    loss_per = y * dist_sq + (1.0 - y) * hinge * hinge           # (TB, 1)

    # Per-sample euclidean distance; OOB rows of a partial last block are
    # clipped by Pallas on writeback.
    eucl_ref[...] = euclidean

    if mask_last:
        # B % TB != 0 (statically known): only the LAST block contains padded
        # rows, so the iota/compare/select masking work is gated behind
        # pl.when and skipped on every other grid step.
        n = pl.num_programs(0)

        @pl.when(i == n - 1)
        def _():
            row = i * block_b + jax.lax.broadcasted_iota(
                jnp.int32, loss_per.shape, 0)
            masked = jnp.where(row < batch, loss_per, 0.0)
            partial_ref[0] = jnp.sum(masked, keepdims=True)

        @pl.when(i != n - 1)
        def _():
            partial_ref[0] = jnp.sum(loss_per, keepdims=True)
    else:
        partial_ref[0] = jnp.sum(loss_per, keepdims=True)


def _vmem_capacity_bytes():
    try:
        info = pltpu.get_tpu_info()
        for attr in ("vmem_capacity_bytes", "vmem_size_bytes", "vmem_bytes"):
            val = getattr(info, attr, None)
            if val:
                return int(val)
    except Exception:
        pass
    return 64 * 1024 * 1024   # conservative fallback (v7x per-TC VMEM)


def _sublane_pack(itemsize):
    # Rows per sublane-packed vreg for the streaming dtype:
    # 8 for 4-byte, 16 for bf16/f16, 32 for int8/fp8.
    if itemsize >= 4:
        return 8
    return 8 * (4 // itemsize)


def _choose_block_b(B, D, itemsize, budget):
    # Per-row VMEM cost estimate:
    #   * x0/x1 streaming blocks, double-buffered:          4 * D * itemsize
    #   * f32 diff / squared-diff temporaries:              ~4 * D
    #   * lane-sparse (TB, 1) columns (y + eucl pipeline buffers and f32
    #     temporaries, each padded to 128 lanes in VMEM):   ~6 * 512
    per_row = 4 * D * itemsize + 4 * D + 6 * 512
    tb = budget // per_row
    pack = _sublane_pack(itemsize)
    tb = (tb // pack) * pack
    tb = max(pack, min(tb, 8192))
    if tb >= B:
        tb = B
    return tb


def contrastive_loss(x0, x1, y, margin=1.0, block_b=None):
    """Pallas equivalent of ContrastiveLoss.forward. Returns (loss, y, euclidean)."""
    assert x0.shape == x1.shape and x0.ndim == 2
    B, D = x0.shape
    y2 = jnp.reshape(y, (B, 1))

    itemsize = jnp.dtype(x0.dtype).itemsize

    # Generation-aware VMEM budgeting: ~28 MiB of streaming buffers where the
    # chip allows it, automatically smaller on v7x (64 MiB physical per TC).
    vmem_cap = _vmem_capacity_bytes()
    vmem_limit = min((vmem_cap * 3) // 4, 64 * 1024 * 1024)
    budget = max(4 * 1024 * 1024,
                 min(28 * 1024 * 1024, vmem_limit - 8 * 1024 * 1024))

    if block_b is None:
        tb = _choose_block_b(B, D, itemsize, budget)
    else:
        tb = min(int(block_b), B)
    n_blocks = pl.cdiv(B, tb)
    mask_last = (B % tb) != 0

    kernel = functools.partial(
        _contrastive_kernel,
        margin=float(margin),
        batch=B,
        block_b=tb,
        mask_last=mask_last,
    )

    cost = pl.CostEstimate(
        flops=3 * B * D + 8 * B,               # sub, mul, reduce-add + column math
        transcendentals=B,                     # sqrt per row
        bytes_accessed=2 * B * D * itemsize
        + B * jnp.dtype(y2.dtype).itemsize
        + B * 4 + n_blocks * 4,
    )

    partials, eucl = pl.pallas_call(
        kernel,
        grid=(n_blocks,),
        in_specs=[
            pl.BlockSpec((tb, D), lambda i: (i, 0)),
            pl.BlockSpec((tb, D), lambda i: (i, 0)),
            pl.BlockSpec((tb, 1), lambda i: (i, 0)),
        ],
        out_specs=[
            # One partial loss sum per grid step (no resident accumulator,
            # so the batch axis can be megacore-sharded on v7x).
            pl.BlockSpec((1, 1, 1), lambda i: (i, 0, 0)),
            pl.BlockSpec((tb, 1), lambda i: (i, 0)),
        ],
        out_shape=[
            jax.ShapeDtypeStruct((n_blocks, 1, 1), jnp.float32),
            jax.ShapeDtypeStruct((B, 1), jnp.float32),
        ],
        compiler_params=pltpu.CompilerParams(
            dimension_semantics=("parallel",),
            vmem_limit_bytes=int(vmem_limit),
        ),
        cost_estimate=cost,
    )(x0, x1, y2)

    loss = jnp.sum(partials) * (0.5 / float(B))
    return loss, y, eucl.reshape(B)


def _reference(x0, x1, y, margin=1.0):
    diff = x0.astype(jnp.float32) - x1.astype(jnp.float32)
    dist_sq = jnp.sum(diff ** 2, axis=1)
    euclidean = jnp.sqrt(dist_sq)
    dist = jnp.maximum(margin - euclidean, 0.0)
    loss = y.astype(jnp.float32) * dist_sq + (1.0 - y.astype(jnp.float32)) * dist ** 2
    return jnp.sum(loss) / 2.0 / x0.shape[0], y, euclidean


if __name__ == "__main__":
    keys = jax.random.split(jax.random.PRNGKey(0), 12)

    # Test 1: f32, B an exact multiple of the tile -> multi-block, no masking.
    B, D = 16, 128
    x0 = jax.random.normal(keys[0], (B, D), dtype=jnp.float32)
    x1 = jax.random.normal(keys[1], (B, D), dtype=jnp.float32)
    y = jax.random.bernoulli(keys[2], 0.5, (B,)).astype(jnp.float32)
    loss, y_out, eucl = contrastive_loss(x0, x1, y, margin=1.0, block_b=8)
    jax.block_until_ready((loss, y_out, eucl))
    ref_loss, _, ref_eucl = _reference(x0, x1, y, margin=1.0)
    assert jnp.allclose(loss, ref_loss, rtol=1e-5, atol=1e-5), (loss, ref_loss)
    assert jnp.allclose(eucl, ref_eucl, rtol=1e-5, atol=1e-5)
    assert jnp.allclose(y_out, y)

    # Test 2: f32, B not a multiple of the tile -> masking on the last block.
    B, D = 20, 256
    x0 = jax.random.normal(keys[3], (B, D), dtype=jnp.float32)
    x1 = jax.random.normal(keys[4], (B, D), dtype=jnp.float32)
    y = jax.random.bernoulli(keys[5], 0.5, (B,)).astype(jnp.float32)
    loss, _, eucl = contrastive_loss(x0, x1, y, margin=1.0, block_b=8)
    jax.block_until_ready((loss, eucl))
    ref_loss, _, ref_eucl = _reference(x0, x1, y, margin=1.0)
    assert jnp.allclose(loss, ref_loss, rtol=1e-5, atol=1e-5), (loss, ref_loss)
    assert jnp.allclose(eucl, ref_eucl, rtol=1e-5, atol=1e-5)

    # Test 3: bf16 inputs stream in native dtype, upcast happens in-kernel.
    B, D = 32, 128
    x0 = jax.random.normal(keys[6], (B, D), dtype=jnp.float32).astype(jnp.bfloat16)
    x1 = jax.random.normal(keys[7], (B, D), dtype=jnp.float32).astype(jnp.bfloat16)
    y = jax.random.bernoulli(keys[8], 0.5, (B,)).astype(jnp.float32)
    loss, _, eucl = contrastive_loss(x0, x1, y, margin=1.0, block_b=16)
    jax.block_until_ready((loss, eucl))
    ref_loss, _, ref_eucl = _reference(x0, x1, y, margin=1.0)
    assert jnp.allclose(loss, ref_loss, rtol=1e-4, atol=1e-4), (loss, ref_loss)
    assert jnp.allclose(eucl, ref_eucl, rtol=1e-4, atol=1e-4)

    # Test 4: automatic block-size selection (single full-array block here).
    B, D = 24, 128
    x0 = jax.random.normal(keys[9], (B, D), dtype=jnp.float32)
    x1 = jax.random.normal(keys[10], (B, D), dtype=jnp.float32)
    y = jax.random.bernoulli(keys[11], 0.5, (B,)).astype(jnp.float32)
    loss, _, eucl = contrastive_loss(x0, x1, y, margin=1.0)
    jax.block_until_ready((loss, eucl))
    ref_loss, _, ref_eucl = _reference(x0, x1, y, margin=1.0)
    assert jnp.allclose(loss, ref_loss, rtol=1e-5, atol=1e-5), (loss, ref_loss)
    assert jnp.allclose(eucl, ref_eucl, rtol=1e-5, atol=1e-5)

    print("KERNEL_OK")
</pallas_src>

<mosaic_0001>
module attributes {stable_mosaic.version = 11 : i64} {
  func.func @_contrastive_kernel(%arg0: i32, %arg1: memref<8x128xf32, #tpu.memory_space<vmem>>, %arg2: memref<8x128xf32, #tpu.memory_space<vmem>>, %arg3: memref<8x1xf32, #tpu.memory_space<vmem>>, %arg4: memref<1x1x1xf32, #tpu.memory_space<vmem>>, %arg5: memref<8x1xf32, #tpu.memory_space<vmem>>) attributes {dimension_semantics = [#tpu.dimension_semantics<parallel>], iteration_bounds = array<i64: 2>, scalar_prefetch = 0 : i64, scratch_operands = 0 : i64, tpu.core_type = #tpu.core_type<tc>, window_params = [{transform_indices = @transform_0, window_bounds = array<i64: 8, 128>}, {transform_indices = @transform_1, window_bounds = array<i64: 8, 128>}, {transform_indices = @transform_2, window_bounds = array<i64: 8, 1>}, {transform_indices = @transform_3, window_bounds = array<i64: 1, 1, 1>}, {transform_indices = @transform_4, window_bounds = array<i64: 8, 1>}]} {
    %c0 = arith.constant 0 : index
    %c0_0 = arith.constant 0 : index
    %0 = vector.load %arg1[%c0, %c0_0] : memref<8x128xf32, #tpu.memory_space<vmem>>, vector<8x128xf32>
    %c0_1 = arith.constant 0 : index
    %c0_2 = arith.constant 0 : index
    %1 = vector.load %arg2[%c0_1, %c0_2] : memref<8x128xf32, #tpu.memory_space<vmem>>, vector<8x128xf32>
    %2 = arith.subf %0, %1 : vector<8x128xf32>
    %3 = arith.mulf %2, %2 : vector<8x128xf32>
    %cst = arith.constant dense<0.000000e+00> : vector<8xf32>
    %4 = vector.multi_reduction <add>, %3, %cst [1] : vector<8x128xf32> to vector<8xf32>
    %5 = vector.shape_cast %4 : vector<8xf32> to vector<8x1xf32>
    %6 = math.sqrt %5 : vector<8x1xf32>
    %cst_3 = arith.constant 1.000000e+00 : f32
    %7 = vector.broadcast %cst_3 : f32 to vector<8x1xf32>
    %8 = arith.subf %7, %6 : vector<8x1xf32>
    %cst_4 = arith.constant 0.000000e+00 : f32
    %9 = vector.broadcast %cst_4 : f32 to vector<8x1xf32>
    %10 = arith.maximumf %8, %9 : vector<8x1xf32>
    %c0_5 = arith.constant 0 : index
    %c0_6 = arith.constant 0 : index
    %11 = vector.load %arg3[%c0_5, %c0_6] : memref<8x1xf32, #tpu.memory_space<vmem>>, vector<8x1xf32>
    %12 = arith.mulf %11, %5 : vector<8x1xf32>
    %cst_7 = arith.constant 1.000000e+00 : f32
    %13 = vector.broadcast %cst_7 : f32 to vector<8x1xf32>
    %14 = arith.subf %13, %11 : vector<8x1xf32>
    %15 = arith.mulf %14, %10 : vector<8x1xf32>
    %16 = arith.mulf %15, %10 : vector<8x1xf32>
    %17 = arith.addf %12, %16 : vector<8x1xf32>
    %c0_8 = arith.constant 0 : index
    %c0_9 = arith.constant 0 : index
    %18 = vector.load %arg5[%c0_8, %c0_9] : memref<8x1xf32, #tpu.memory_space<vmem>>, vector<8x1xf32>
    tpu.vector_store %arg5[%c0_8, %c0_9], %6 {strides = array<i32>} : memref<8x1xf32, #tpu.memory_space<vmem>>, vector<8x1xf32>,
    %19 = vector.shape_cast %17 : vector<8x1xf32> to vector<1x8x1xf32>
    %cst_10 = arith.constant dense<0.000000e+00> : vector<1xf32>
    %20 = vector.multi_reduction <add>, %19, %cst_10 [1, 2] : vector<1x8x1xf32> to vector<1xf32>
    %21 = vector.shape_cast %20 : vector<1xf32> to vector<1x1x1xf32>
    %22 = vector.extract %21[0, 0, 0] : f32 from vector<1x1x1xf32>
    %23 = vector.broadcast %22 : f32 to vector<1x1xf32>
    %c0_11 = arith.constant 0 : index
    %c0_12 = arith.constant 0 : index
    %c0_13 = arith.constant 0 : index
    %24 = vector.load %arg4[%c0_11, %c0_12, %c0_13] : memref<1x1x1xf32, #tpu.memory_space<vmem>>, vector<1x1x1xf32>
    %25 = vector.shape_cast %24 : vector<1x1x1xf32> to vector<1x1xf32>
    %26 = vector.shape_cast %23 : vector<1x1xf32> to vector<1x1x1xf32>
    tpu.vector_store %arg4[%c0_11, %c0_12, %c0_13], %26 {strides = array<i32>} : memref<1x1x1xf32, #tpu.memory_space<vmem>>, vector<1x1x1xf32>,
    return
  }
  func.func @transform_0(%arg0: i32) -> (i32, i32) {
    %c0_i32 = arith.constant 0 : i32
    %c0_i32_0 = arith.constant 0 : i32
    return %arg0, %c0_i32 : i32, i32
  }
  func.func @transform_1(%arg0: i32) -> (i32, i32) {
    %c0_i32 = arith.constant 0 : i32
    %c0_i32_0 = arith.constant 0 : i32
    return %arg0, %c0_i32 : i32, i32
  }
  func.func @transform_2(%arg0: i32) -> (i32, i32) {
    %c0_i32 = arith.constant 0 : i32
    %c0_i32_0 = arith.constant 0 : i32
    return %arg0, %c0_i32 : i32, i32
  }
  func.func @transform_3(%arg0: i32) -> (i32, i32, i32) {
    %c0_i32 = arith.constant 0 : i32
    %c0_i32_0 = arith.constant 0 : i32
    %c0_i32_1 = arith.constant 0 : i32
    return %arg0, %c0_i32, %c0_i32_0 : i32, i32, i32
  }
  func.func @transform_4(%arg0: i32) -> (i32, i32) {
    %c0_i32 = arith.constant 0 : i32
    %c0_i32_0 = arith.constant 0 : i32
    return %arg0, %c0_i32 : i32, i32
  }
}

</mosaic_0001>

<bundles_post_ra>
// kernel: tpu_custom_call.1
= control target key start
LH: loop header
LB: loop body
LE: loop exit
PB: predicated region body
PF: predicated region fallthrough
CT: control target
= control target key end

     0   :  { %10 = vsyncpa [#allocation3], 0  ;;  %s673_s0 = inlined_call_operand.vmem [shape: f32[16,128], index: 0, kind: input, shape index: {}]   ;;  %s674_s1 = inlined_call_operand.hbm [shape: f32[16,128], index: 1, kind: input, shape index: {}]   ;;  %s675_s2 = inlined_call_operand.vmem [shape: f32[16,1], index: 2, kind: input, shape index: {}]   ;;  %s676_s3 = inlined_call_operand.vmem [shape: f32[2,1,1], index: 3, kind: output, shape index: {0}]   ;;  %s677_s4 = inlined_call_operand.vmem [shape: f32[16,1], index: 4, kind: output, shape index: {1}]  }
   0x1   :  { %12 = vsyncpa [#allocation3 + $0x1], 0  ;;  %s553_s15 = smov 0   ;;  %s555_s16 = smov 0  }
   0x2   :  { %s557_s17 = smov 0   ;;  %s559_s18 = smov 0  }
   0x3 LB: > { %s572_s19 = sadd.s32 4294967295, %s525_s18   ;;  %s575_s20 = sadd.s32 1, %s525_s18   ;;  %s525_s18 = sphi %s559_s18, %s685_s18   ;;  %s521_s17 = sphi %s557_s17, %s684_s17   ;;  %s517_s16 = sphi %s555_s16, %s683_s16   ;;  %s513_s15 = sphi %s553_s15, %s682_s15  }
   0x4   : > { %s48_s21 = ssub.s32 %s525_s18, %s575_s20  ;;  %s51_s22 = sadd.s32 1, %s521_s17 }
   0x5   : > { %p49_p0 = scmp.eq.s32.totalorder %s48_s21, 0  ;;  %p58_p1 = scmp.ne.s32.totalorder %s521_s17, %s517_s16 }
   0x6   : > { %p59_p2 = scmp.eq.s32.totalorder %s525_s18, 0  ;;  %p64_p3 = scmp.ne.s32.totalorder %s517_s16, %s513_s15 }
   0x7   : > { %s585_s23 = scalar_select %p49_p0, %s521_s17, %s51_s22  }
   0x8   : > { %p60_p4 = por %p59_p2, %p58_p1  ;;  %p65_p5 = scmp.eq.s32.totalorder %s572_s19, 0 }
   0x9   : > { %p426_p6 = scmp.lt.s32.totalorder %s525_s18, 2  ;;  %s173_s25 = sand.u32 1, %s521_s17  }
   0xa   : > { %p589_p7 = por %p65_p5, %p64_p3  ;;  %s409_s26 = sshll.u32 %s173_s25, 3 }
   0xb   : > { %s410_s27 = sshll.u32 %s525_s18, 7  ;;  %s177_s5 = scalar_lea.vmem [#allocation2], %s409_s26 }
   0xc   : > { %s598_s30 = scalar_lea.hbm %s674_s1, %s410_s27  ;;  %s184_s6 = sshll.u32 %s177_s5, 4  ;;  %s600_s6 = int_to_ptr.vmem [resolvable:$true] %s184_s6 }
   0xd   : > { %p602_p8 = pnand %p426_p6, %p60_p4  ;;  %s174_s8 = scalar_lea.sflag [#allocation3], %s173_s25 }
   0xe   : > { %s461_s9 = scalar_lea.hbm %s598_s30, 128  ;;  %s466_s12 = scalar_lea.hbm %s674_s1, 256 }
   0xf   : > { %p462_p11 = scmp.ne.s32.totalorder %s598_s30, %s461_s9  ;;  %p463_p12 = pneg %p602_p8 }
  0x10   : > { %p467_p1 = scmp.lt.u32.totalorder %s598_s30, %s674_s1  ;;  %p468_p2 = scmp.lt.u32.totalorder %s466_s12, %s461_s9 }
  0x11   : > { %p464_p13 = pnand %p463_p12, %p462_p11  ;;  %p470_p4 = scmp.lt.u32.totalorder %s461_s9, %s598_s30 }
  0x12   : > { %p469_p3 = por %p468_p2, %p467_p1 }
  0x13   : > { %p465_p0 = pneg %p464_p13 }
  0x14   : > { %p471_p5 = por %p470_p4, %p469_p3 }
  0x16   : > { %p472_p6 = pnand %p471_p5, %p465_p0 }
  0x18   : > { %475 = shalt.err (!%p472_p6)
}
  0x19   : > { %s476_s15 = scalar_lea.vmem %s600_s6, 128  ;;  %s527_s21 = smov [#allocation2]  }
  0x1a   : > { %p477_p11 = scmp.ne.s32.totalorder %s600_s6, %s476_s15  ;;  %s481_s22 = sshll.u32 %s527_s21, 4  ;;  %s482_s22 = int_to_ptr.vmem [resolvable:$false] %s481_s22 }
  0x1b   : > { %s483_s25 = scalar_lea.vmem %s482_s22, 256  ;;  %p484_p10 = scmp.lt.s32.totalorder %s600_s6, %s482_s22 }
  0x1c   : > { %p479_p13 = pnand %p477_p11, %p463_p12  ;;  %p485_p1 = scmp.lt.s32.totalorder %s483_s25, %s476_s15 }
  0x1e   : > { %p480_p9 = pneg %p479_p13  ;;  %p486_p2 = por %p485_p1, %p484_p10 }
  0x20   : > { %p487_p3 = pnand %p486_p2, %p480_p9 }
  0x22   : > { %490 = shalt.err (!%p487_p3)
}
  0x23   : > { %425 = dma.hbm_to_vmem [thread:$0]  (!%p602_p8), %s598_s30, 128, %s600_s6, %s174_s8  }
  0x24   : > { %p680_p0 = scmp.lt.s32.totalorder %s525_s18, 3  ;;  %p681_p4 = scmp.ge.s32.totalorder %s525_s18, 1 }
  0x26   : > { %p197_p12 = pnand %p681_p4, %p680_p0 }
  0x27   : > { %s202_s26 = sand.u32 (!%p197_p12), 1, %s517_s16  }
  0x28   : > { %200 = sbr.rel (%p197_p12) target bundleno = 432 (0x1b0), region = 32  ;;  %s412_s27 = sshll.u32 (!%p197_p12), %s202_s26, 3 }
  0x29   : > { %s203_s28 = scalar_lea.sflag (!%p197_p12), [#allocation3], %s202_s26  ;;  %s206_s29 = scalar_lea.vmem (!%p197_p12), [#allocation2], %s412_s27 }
  0x2f   : > { %508 = dma.done.wait (%p589_p7), %s203_s28, 128  }
  0x30   : > { %510 = vsyncadd (%p589_p7), %s203_s28, 4294967168  ;;  %p241_p9 = scmp.lt.s32.totalorder %s572_s19, 1  ;;  %v257_v1 = vld [vmem:[%s206_s29] sm:$0xff]  ;;  %vm277_vm1 = vcmask 7168   ;;  %vm290_vm3 = vcmask 0  }
  0x32   : > { %s687_s19 = smov (!%p241_p9, %s572_s19), 1 }
  0x33   : > { %s413_s18 = sshll.u32 %s687_s19, 3  ;;  %s251_s14 = scalar_lea.vmem %s676_s3, %s687_s19 }
  0x34   : > { %s244_s6 = scalar_lea.vmem %s673_s0, %s413_s18  ;;  %s248_s8 = scalar_lea.vmem %s675_s2, %s413_s18 }
  0x35   : > { %v256_v0 = vld [vmem:[%s244_s6] sm:$0xff]  ;;  %s255_s11 = scalar_lea.vmem %s677_s4, %s413_s18 }
  0x36   : > { %v258_v2 = vsub.f32 %v256_v0, %v257_v1  ;;  %v271_v10 = vld [vmem:[%s248_s8] sm:$0xff] }
  0x37   : > { %v273_v12 = vsub.f32 1.0, %v271_v10 }
  0x38   : > { %v259_v3 = vmul.f32 %v258_v2, %v258_v2 }
  0x3a   : > { %260 = vadd.xlane.f32.xlu0 %v259_v3 }
  0xc7   : > { %v261_v4 = vpop.xlane.xlu0 %260 }
  0xc8   : > { %459 = vrsqrt.f32 %v261_v4  ;;  %vm264_vm0 = vcmp.eq.f32.partialorder %v261_v4, inf  ;;  %v267_v7 = vand.u32 2147483648, %v261_v4  ;;  %vm266_vm2 = vcmp.eq.f32.partialorder %v261_v4, 0.0 }
  0xc9   : > { %v272_v15 = vmul.f32 %v271_v10, %v261_v4 }
  0xd2   : > { %v460_v5 = vpop.eup %459 }
  0xd3   : > { %v263_v6 = vmul.f32 %v460_v5, %v261_v4 }
  0xd5   : > { %v265_v8 = vsel %vm264_vm0, %v261_v4, %v263_v6 }
  0xd6   : > { %v268_v9 = vsel %vm266_vm2, %v267_v7, %v265_v8 }
  0xd7   : > { %v269_v11 = vsub.f32 1.0, %v268_v9  ;;  %278 = vst.msk [vmem:[%s255_s11] sm:$0xff] %vm277_vm1, %v268_v9 }
  0xd9   : > { %v270_v13 = vmax.f32 %v269_v11, 0.0 }
  0xdb   : > { %v274_v14 = vmul.f32 %v273_v12, %v270_v13 }
  0xdd   : > { %v275_v16 = vmul.f32 %v274_v14, %v270_v13 }
  0xdf   : > { %v276_v17 = vadd.f32 %v275_v16, %v272_v15 }
  0xe1   : > { %v279_v18 = vsel %vm277_vm1, %v276_v17, 0.0 }
  0xe2   : > { %280 = vadd.xlane.f32.xlu0 %v279_v18 }
 0x16f   : > { %v281_v19 = vpop.xlane.xlu0 %280 }
 0x170   : > { %v282_v20 = vrot.slane %v281_v19, 4 }
 0x172   : > { %v283_v21 = vadd.f32 %v282_v20, %v281_v19 }
 0x174   : > { %v284_v22 = vrot.slane %v283_v21, 2 }
 0x176   : > { %v285_v23 = vadd.f32 %v284_v22, %v283_v21 }
 0x178   : > { %v286_v24 = vrot.slane %v285_v23, 1 }
 0x17a   : > { %v287_v25 = vadd.f32 %v286_v24, %v285_v23 }
 0x17c   : > { %418 = vpush %v287_v25 }
 0x1ad   : > { %s419_s15 = spop %418 }
 0x1ae   : > { %v289_v26 = vstv %s419_s15 }
 0x1af   : > { %291 = vst.msk [vmem:[%s251_s14] sm:$0x1] %vm290_vm3, %v289_v26 }
 0x1b0 PF: > { %p15_p7 = scmp.ge.s32.totalorder %s575_s20, 4   ;;  %s682_s15 = smov %s517_s16 }
 0x1b1   : > { %s683_s16 = smov %s521_s17  ;;  %s684_s17 = smov %s585_s23 }
 0x1b2   : > { %s685_s18 = smov %s575_s20  ;;  %17 = sbr.rel (!%p15_p7) target bundleno = 3 (0x3), region = 90 }
 0x1b9   :  { %323 = vsyncpa [#allocation3], 1 }
 0x1ba   :  { %325 = vsyncpa [#allocation3 + $0x1], 1 }

</bundles_post_ra>
